<compile_context>
chip_gen: v7x
topology: tpu7x:2x2x1
jax: 0.10.0
libtpu: 0.0.40
codegen_flags: <defaults>
</compile_context>

<pallas_src>
import functools

import jax
import jax.numpy as jnp
from jax.experimental import pallas as pl
from jax.experimental.pallas import tpu as pltpu

BN_EPS = 1e-5


def _round_up(x, m):
    return (x + m - 1) // m * m


def _vmem_capacity_bytes():
    try:
        info = pltpu.get_tpu_info()
        return int(getattr(info, "vmem_capacity_bytes", 64 * 1024 * 1024))
    except Exception:
        return 64 * 1024 * 1024  # conservative default: v7x per-TensorCore VMEM


def _tile_candidates(dim_p):
    # dim_p is always a multiple of 128, so 128 is always a valid fallback.
    return sorted({c for c in (dim_p, 2048, 1024, 512, 256, 128)
                   if c <= dim_p and dim_p % c == 0}, reverse=True)


def _vmem_limit(est_bytes, cap):
    # derived from actual buffer bytes (+25% / +2MiB slack for compiler scratch),
    # floored at the 32 MiB default and capped below physical capacity.
    return int(min(cap * 9 // 10, max(est_bytes * 5 // 4 + (2 << 20), 32 << 20)))


def _layer1_vmem_bytes(n_p, in_p, th1, cbytes):
    x_buf = n_p * in_p * cbytes                   # Buffered(1): single copy
    w1_buf = in_p * th1 * cbytes * 2              # double-buffered
    gb_buf = 2 * (8 * th1 * 4) * 2                # gamma/beta (sublane padded)
    h_buf = n_p * th1 * cbytes * 2                # double-buffered output
    return x_buf + w1_buf + gb_buf + h_buf


def _layer2_vmem_bytes(n_p, th2, to, cbytes, k_steps):
    h_buf = n_p * th2 * cbytes * (1 if k_steps == 1 else 2)
    w2_buf = th2 * to * cbytes * 2
    b2_buf = (8 * to * 4) * 2
    o_buf = n_p * to * 4 * 2
    return h_buf + w2_buf + b2_buf + o_buf


# --------------------------- kernel 1: Linear + BN + ReLU --------------------
def _layer1_bn_relu_kernel(x_ref, w1_ref, g_ref, beta_ref, h_ref, *, inv_n):
    # x @ w1[:, k-tile]: bf16 MXU operands, f32 accumulation.
    h = jnp.dot(x_ref[...], w1_ref[...], preferred_element_type=jnp.float32)

    # Train-mode BatchNorm1d stats over the *real* batch.  Zero-padded batch
    # rows of x give h == 0 and contribute nothing to either sum, so dividing
    # by the true batch size (inv_n) keeps the statistics exact.
    mean = jnp.sum(h, axis=0, keepdims=True) * inv_n
    mean_sq = jnp.sum(h * h, axis=0, keepdims=True) * inv_n
    var = jnp.maximum(mean_sq - mean * mean, 0.0)

    # Fused per-feature scale/shift + ReLU.  gamma/beta padding is zero-filled,
    # so padded hidden features come out of BN+ReLU as exactly 0.
    scale = g_ref[...] * jax.lax.rsqrt(var + BN_EPS)   # rsqrt -> EUP slot
    shift = beta_ref[...] - mean * scale
    h_ref[...] = jnp.maximum(h * scale + shift, 0.0).astype(h_ref.dtype)


# --------------------------- kernel 2: h @ w2 + b2 ----------------------------
def _layer2_kernel(h_ref, w2_ref, b2_ref, o_ref):
    k = pl.program_id(1)

    @pl.when(k == 0)
    def _():
        o_ref[...] = jnp.broadcast_to(b2_ref[...], o_ref.shape)

    # Output block index is constant across k -> block stays VMEM-resident;
    # accumulate straight into it (no separate accumulator scratch).
    o_ref[...] += jnp.dot(h_ref[...], w2_ref[...],
                          preferred_element_type=jnp.float32)


def make_prediction_mlp(w1, b1, gamma, beta, w2, b2, *, compute_dtype=jnp.bfloat16):
    """Builds a jitted forward(x) for prediction_MLP with train-mode BatchNorm.

    Parameters are padded / cast exactly once here (not on every call).
    """
    in_dim, hidden_dim = w1.shape
    out_dim = w2.shape[1]

    # b1 is dropped on purpose: a per-feature bias applied immediately before
    # *train-mode* BatchNorm cancels exactly in (h - mean).
    # TODO(synk): an eval-mode (running-stats) variant must re-introduce b1.
    del b1

    in_p = _round_up(in_dim, 128)
    hid_p = _round_up(hidden_dim, 128)
    out_p = _round_up(out_dim, 128)
    cbytes = jnp.dtype(compute_dtype).itemsize

    def _pad2(a, rows, cols, dtype):
        a = a.astype(dtype)
        if a.shape == (rows, cols):
            return a                      # skip the copy when already aligned
        return jnp.zeros((rows, cols), dtype).at[:a.shape[0], :a.shape[1]].set(a)

    # Pre-pad / pre-cast parameters ONCE.  gamma/beta/b2 padding must remain
    # zero-filled (see kernel-1 comment about padded hidden features).
    w1p = _pad2(w1, in_p, hid_p, compute_dtype)
    w2p = _pad2(w2, hid_p, out_p, compute_dtype)
    gp = _pad2(gamma.reshape(1, -1), 1, hid_p, jnp.float32)
    bp = _pad2(beta.reshape(1, -1), 1, hid_p, jnp.float32)
    b2p = _pad2(b2.reshape(1, -1), 1, out_p, jnp.float32)

    cap = _vmem_capacity_bytes()
    budget = cap * 65 // 100              # headroom for compiler-internal scratch

    @jax.jit
    def forward(x):
        n = x.shape[0]
        n_p = _round_up(n, 16)            # sublane-dense bf16 x / h, f32 out
        xp = _pad2(x, n_p, in_p, compute_dtype)

        # ---------------- kernel 1: h = ReLU(BN(x @ w1)) ----------------
        # Hidden tiles are per-feature independent (x is full-batch resident),
        # so the single grid axis is fully parallel.
        th1 = next((t for t in _tile_candidates(hid_p)
                    if _layer1_vmem_bytes(n_p, in_p, t, cbytes) <= budget), 128)
        # TODO(synk): add an N-tiled two-pass BN path (per-feature sum/sum-sq
        # partials) for very large batches where the full-batch x / h blocks
        # alone exceed VMEM.
        h = pl.pallas_call(
            functools.partial(_layer1_bn_relu_kernel, inv_n=1.0 / n),
            out_shape=jax.ShapeDtypeStruct((n_p, hid_p), compute_dtype),
            grid_spec=pltpu.PrefetchScalarGridSpec(
                num_scalar_prefetch=0,
                grid=(hid_p // th1,),
                in_specs=[
                    # x: constant index map -> fetched once; single-buffer it.
                    pl.BlockSpec((n_p, in_p), lambda k: (0, 0),
                                 pipeline_mode=pl.Buffered(1)),
                    pl.BlockSpec((in_p, th1), lambda k: (0, k)),   # w1 tile
                    pl.BlockSpec((1, th1), lambda k: (0, k)),      # gamma tile
                    pl.BlockSpec((1, th1), lambda k: (0, k)),      # beta tile
                ],
                out_specs=pl.BlockSpec((n_p, th1), lambda k: (0, k)),
            ),
            compiler_params=pltpu.CompilerParams(
                dimension_semantics=("parallel",),
                vmem_limit_bytes=_vmem_limit(
                    _layer1_vmem_bytes(n_p, in_p, th1, cbytes), cap),
            ),
        )(xp, w1p, gp, bp)

        # ---------------- kernel 2: out = h @ w2 + b2 ----------------
        # Prefer the widest output-column tile (cuts h re-reads), then the
        # widest hidden (reduction) tile that still fits the VMEM budget.
        to, th2 = 128, 128
        for cand_to in _tile_candidates(out_p):
            cand_th = next(
                (t for t in _tile_candidates(hid_p)
                 if _layer2_vmem_bytes(n_p, t, cand_to, cbytes,
                                       hid_p // t) <= budget), None)
            if cand_th is not None:
                to, th2 = cand_to, cand_th
                break
        k_steps = hid_p // th2
        h_mode = pl.Buffered(1) if k_steps == 1 else None

        out = pl.pallas_call(
            _layer2_kernel,
            out_shape=jax.ShapeDtypeStruct((n_p, out_p), jnp.float32),
            grid_spec=pltpu.PrefetchScalarGridSpec(
                num_scalar_prefetch=0,
                grid=(out_p // to, k_steps),
                in_specs=[
                    pl.BlockSpec((n_p, th2), lambda j, k: (0, k),
                                 pipeline_mode=h_mode),            # h tile
                    pl.BlockSpec((th2, to), lambda j, k: (k, j)),  # w2 tile
                    pl.BlockSpec((1, to), lambda j, k: (0, j)),    # b2 tile
                ],
                out_specs=pl.BlockSpec((n_p, to), lambda j, k: (0, j)),
            ),
            compiler_params=pltpu.CompilerParams(
                dimension_semantics=("parallel", "arbitrary"),
                vmem_limit_bytes=_vmem_limit(
                    _layer2_vmem_bytes(n_p, th2, to, cbytes, k_steps), cap),
            ),
        )(h, w2p, b2p)

        if (n_p, out_p) != (n, out_dim):
            out = out[:n, :out_dim]
        return out

    return forward


# ------------------------------- test harness --------------------------------
def init_params(key, in_dim, hidden_dim):
    out_dim = in_dim
    k1, k2, k3, k4 = jax.random.split(key, 4)
    # PyTorch nn.Linear default init: U(-1/sqrt(fan_in), 1/sqrt(fan_in))
    lim1 = 1.0 / jnp.sqrt(in_dim)
    lim2 = 1.0 / jnp.sqrt(hidden_dim)
    w1 = jax.random.uniform(k1, (in_dim, hidden_dim), jnp.float32, -lim1, lim1)
    b1 = jax.random.uniform(k2, (1, hidden_dim), jnp.float32, -lim1, lim1)
    w2 = jax.random.uniform(k3, (hidden_dim, out_dim), jnp.float32, -lim2, lim2)
    b2 = jax.random.uniform(k4, (1, out_dim), jnp.float32, -lim2, lim2)
    gamma = jnp.ones((1, hidden_dim), jnp.float32)   # BatchNorm1d weight
    beta = jnp.zeros((1, hidden_dim), jnp.float32)   # BatchNorm1d bias
    return w1, b1, gamma, beta, w2, b2


def _reference(x, w1, b1, gamma, beta, w2, b2):
    # Pure-JAX f32 reference with PyTorch train-mode BN semantics.
    h = x @ w1 + b1
    mean = h.mean(axis=0, keepdims=True)
    var = ((h - mean) ** 2).mean(axis=0, keepdims=True)
    h = (h - mean) * jax.lax.rsqrt(var + BN_EPS) * gamma + beta
    h = jnp.maximum(h, 0.0)
    return h @ w2 + b2


if __name__ == "__main__":
    N, IN_DIM, HIDDEN_DIM = 8, 32, 64
    key = jax.random.PRNGKey(0)
    kx, kp = jax.random.split(key)
    x = jax.random.normal(kx, (N, IN_DIM), jnp.float32)
    params = init_params(kp, IN_DIM, HIDDEN_DIM)

    forward = make_prediction_mlp(*params)   # pads / casts weights once
    out = forward(x)
    jax.block_until_ready(out)
    assert out.shape == (N, IN_DIM), out.shape

    # sanity check against the f32 reference (kernel uses bf16 MXU operands)
    ref = _reference(x, *params)
    max_err = float(jnp.max(jnp.abs(out - ref)))
    assert max_err < 0.1, f"max abs error too large: {max_err}"

    print("KERNEL_OK")
</pallas_src>

<mosaic_0001>
module attributes {stable_mosaic.version = 11 : i64} {
  func.func @_layer2_kernel(%arg0: i32, %arg1: i32, %arg2: memref<16x128xbf16, #tpu.memory_space<vmem>>, %arg3: memref<128x128xbf16, #tpu.memory_space<vmem>>, %arg4: memref<1x128xf32, #tpu.memory_space<vmem>>, %arg5: memref<16x128xf32, #tpu.memory_space<vmem>>) attributes {dimension_semantics = [#tpu.dimension_semantics<parallel>, #tpu.dimension_semantics<arbitrary>], iteration_bounds = array<i64: 1, 1>, scalar_prefetch = 0 : i64, scratch_operands = 0 : i64, tpu.core_type = #tpu.core_type<tc>, window_params = [{pipeline_mode = #tpu.pipeline_mode<synchronous>, transform_indices = @transform_0, window_bounds = array<i64: 16, 128>}, {transform_indices = @transform_1, window_bounds = array<i64: 128, 128>}, {transform_indices = @transform_2, window_bounds = array<i64: 1, 128>}, {transform_indices = @transform_3, window_bounds = array<i64: 16, 128>}]} {
    %c0_i32 = arith.constant 0 : i32
    %0 = arith.cmpi eq, %arg1, %c0_i32 : i32
    %1 = arith.extui %0 : i1 to i32
    %c0_i32_0 = arith.constant 0 : i32
    %2 = arith.cmpi ne, %1, %c0_i32_0 : i32
    scf.if %2 {
      %c0_8 = arith.constant 0 : index
      %c0_9 = arith.constant 0 : index
      %9 = vector.load %arg4[%c0_8, %c0_9] : memref<1x128xf32, #tpu.memory_space<vmem>>, vector<1x128xf32>
      %10 = vector.shape_cast %9 : vector<1x128xf32> to vector<1x128xf32>
      %11 = vector.broadcast %10 : vector<1x128xf32> to vector<16x128xf32>
      %c0_10 = arith.constant 0 : index
      %c0_11 = arith.constant 0 : index
      %12 = vector.load %arg5[%c0_10, %c0_11] : memref<16x128xf32, #tpu.memory_space<vmem>>, vector<16x128xf32>
      tpu.vector_store %arg5[%c0_10, %c0_11], %11 {strides = array<i32>} : memref<16x128xf32, #tpu.memory_space<vmem>>, vector<16x128xf32>,
    } else {
    }
    %c0 = arith.constant 0 : index
    %c0_1 = arith.constant 0 : index
    %3 = vector.load %arg5[%c0, %c0_1] : memref<16x128xf32, #tpu.memory_space<vmem>>, vector<16x128xf32>
    %c0_2 = arith.constant 0 : index
    %c0_3 = arith.constant 0 : index
    %4 = vector.load %arg2[%c0_2, %c0_3] : memref<16x128xbf16, #tpu.memory_space<vmem>>, vector<16x128xbf16>
    %c0_4 = arith.constant 0 : index
    %c0_5 = arith.constant 0 : index
    %5 = vector.load %arg3[%c0_4, %c0_5] : memref<128x128xbf16, #tpu.memory_space<vmem>>, vector<128x128xbf16>
    %cst = arith.constant dense<0.000000e+00> : vector<16x128xf32>
    %6 = tpu.matmul %4, %5, %cst {dimension_numbers = #tpu.dot_dimension_numbers<[1], [0], [0], [1], [0, 0, 1, 1], [], []>} : vector<16x128xbf16>, vector<128x128xbf16>, vector<16x128xf32> -> vector<16x128xf32>
    %7 = arith.addf %3, %6 : vector<16x128xf32>
    %c0_6 = arith.constant 0 : index
    %c0_7 = arith.constant 0 : index
    %8 = vector.load %arg5[%c0_6, %c0_7] : memref<16x128xf32, #tpu.memory_space<vmem>>, vector<16x128xf32>
    tpu.vector_store %arg5[%c0_6, %c0_7], %7 {strides = array<i32>} : memref<16x128xf32, #tpu.memory_space<vmem>>, vector<16x128xf32>,
    return
  }
  func.func @transform_0(%arg0: i32, %arg1: i32) -> (i32, i32) {
    %c0_i32 = arith.constant 0 : i32
    %c0_i32_0 = arith.constant 0 : i32
    return %c0_i32, %arg1 : i32, i32
  }
  func.func @transform_1(%arg0: i32, %arg1: i32) -> (i32, i32) {
    %c0_i32 = arith.constant 0 : i32
    return %arg1, %arg0 : i32, i32
  }
  func.func @transform_2(%arg0: i32, %arg1: i32) -> (i32, i32) {
    %c0_i32 = arith.constant 0 : i32
    %c0_i32_0 = arith.constant 0 : i32
    return %c0_i32, %arg0 : i32, i32
  }
  func.func @transform_3(%arg0: i32, %arg1: i32) -> (i32, i32) {
    %c0_i32 = arith.constant 0 : i32
    %c0_i32_0 = arith.constant 0 : i32
    return %c0_i32, %arg0 : i32, i32
  }
}

module attributes {stable_mosaic.version = 11 : i64} {
  func.func @_layer1_bn_relu_kernel(%arg0: i32, %arg1: memref<16x128xbf16, #tpu.memory_space<vmem>>, %arg2: memref<128x128xbf16, #tpu.memory_space<vmem>>, %arg3: memref<1x128xf32, #tpu.memory_space<vmem>>, %arg4: memref<1x128xf32, #tpu.memory_space<vmem>>, %arg5: memref<16x128xbf16, #tpu.memory_space<vmem>>) attributes {dimension_semantics = [#tpu.dimension_semantics<parallel>], iteration_bounds = array<i64: 1>, scalar_prefetch = 0 : i64, scratch_operands = 0 : i64, tpu.core_type = #tpu.core_type<tc>, window_params = [{pipeline_mode = #tpu.pipeline_mode<synchronous>, transform_indices = @transform_0, window_bounds = array<i64: 16, 128>}, {transform_indices = @transform_1, window_bounds = array<i64: 128, 128>}, {transform_indices = @transform_2, window_bounds = array<i64: 1, 128>}, {transform_indices = @transform_3, window_bounds = array<i64: 1, 128>}, {transform_indices = @transform_4, window_bounds = array<i64: 16, 128>}]} {
    %c0 = arith.constant 0 : index
    %c0_0 = arith.constant 0 : index
    %0 = vector.load %arg1[%c0, %c0_0] : memref<16x128xbf16, #tpu.memory_space<vmem>>, vector<16x128xbf16>
    %c0_1 = arith.constant 0 : index
    %c0_2 = arith.constant 0 : index
    %1 = vector.load %arg2[%c0_1, %c0_2] : memref<128x128xbf16, #tpu.memory_space<vmem>>, vector<128x128xbf16>
    %cst = arith.constant dense<0.000000e+00> : vector<16x128xf32>
    %2 = tpu.matmul %0, %1, %cst {dimension_numbers = #tpu.dot_dimension_numbers<[1], [0], [0], [1], [0, 0, 1, 1], [], []>} : vector<16x128xbf16>, vector<128x128xbf16>, vector<16x128xf32> -> vector<16x128xf32>
    %cst_3 = arith.constant dense<0.000000e+00> : vector<128xf32>
    %3 = vector.multi_reduction <add>, %2, %cst_3 [0] : vector<16x128xf32> to vector<128xf32>
    %4 = vector.shape_cast %3 : vector<128xf32> to vector<1x128xf32>
    %cst_4 = arith.constant 1.250000e-01 : f32
    %5 = vector.broadcast %cst_4 : f32 to vector<1x128xf32>
    %6 = arith.mulf %4, %5 : vector<1x128xf32>
    %7 = arith.mulf %2, %2 : vector<16x128xf32>
    %cst_5 = arith.constant dense<0.000000e+00> : vector<128xf32>
    %8 = vector.multi_reduction <add>, %7, %cst_5 [0] : vector<16x128xf32> to vector<128xf32>
    %9 = vector.shape_cast %8 : vector<128xf32> to vector<1x128xf32>
    %cst_6 = arith.constant 1.250000e-01 : f32
    %10 = vector.broadcast %cst_6 : f32 to vector<1x128xf32>
    %11 = arith.mulf %9, %10 : vector<1x128xf32>
    %12 = arith.mulf %6, %6 : vector<1x128xf32>
    %13 = arith.subf %11, %12 : vector<1x128xf32>
    %cst_7 = arith.constant 0.000000e+00 : f32
    %14 = vector.broadcast %cst_7 : f32 to vector<1x128xf32>
    %15 = arith.maximumf %13, %14 : vector<1x128xf32>
    %c0_8 = arith.constant 0 : index
    %c0_9 = arith.constant 0 : index
    %16 = vector.load %arg3[%c0_8, %c0_9] : memref<1x128xf32, #tpu.memory_space<vmem>>, vector<1x128xf32>
    %cst_10 = arith.constant 9.99999974E-6 : f32
    %17 = vector.broadcast %cst_10 : f32 to vector<1x128xf32>
    %18 = arith.addf %15, %17 : vector<1x128xf32>
    %19 = math.rsqrt %18 : vector<1x128xf32>
    %20 = arith.mulf %16, %19 : vector<1x128xf32>
    %c0_11 = arith.constant 0 : index
    %c0_12 = arith.constant 0 : index
    %21 = vector.load %arg4[%c0_11, %c0_12] : memref<1x128xf32, #tpu.memory_space<vmem>>, vector<1x128xf32>
    %22 = arith.mulf %6, %20 : vector<1x128xf32>
    %23 = arith.subf %21, %22 : vector<1x128xf32>
    %24 = vector.broadcast %20 : vector<1x128xf32> to vector<16x128xf32>
    %25 = arith.mulf %2, %24 : vector<16x128xf32>
    %26 = vector.broadcast %23 : vector<1x128xf32> to vector<16x128xf32>
    %27 = arith.addf %25, %26 : vector<16x128xf32>
    %cst_13 = arith.constant 0.000000e+00 : f32
    %28 = vector.broadcast %cst_13 : f32 to vector<16x128xf32>
    %29 = arith.maximumf %27, %28 : vector<16x128xf32>
    %30 = arith.truncf %29 : vector<16x128xf32> to vector<16x128xbf16>
    %c0_14 = arith.constant 0 : index
    %c0_15 = arith.constant 0 : index
    %31 = vector.load %arg5[%c0_14, %c0_15] : memref<16x128xbf16, #tpu.memory_space<vmem>>, vector<16x128xbf16>
    tpu.vector_store %arg5[%c0_14, %c0_15], %30 {strides = array<i32>} : memref<16x128xbf16, #tpu.memory_space<vmem>>, vector<16x128xbf16>,
    return
  }
  func.func @transform_0(%arg0: i32) -> (i32, i32) {
    %c0_i32 = arith.constant 0 : i32
    %c0_i32_0 = arith.constant 0 : i32
    %c0_i32_1 = arith.constant 0 : i32
    return %c0_i32, %c0_i32_0 : i32, i32
  }
  func.func @transform_1(%arg0: i32) -> (i32, i32) {
    %c0_i32 = arith.constant 0 : i32
    %c0_i32_0 = arith.constant 0 : i32
    return %c0_i32, %arg0 : i32, i32
  }
  func.func @transform_2(%arg0: i32) -> (i32, i32) {
    %c0_i32 = arith.constant 0 : i32
    %c0_i32_0 = arith.constant 0 : i32
    return %c0_i32, %arg0 : i32, i32
  }
  func.func @transform_3(%arg0: i32) -> (i32, i32) {
    %c0_i32 = arith.constant 0 : i32
    %c0_i32_0 = arith.constant 0 : i32
    return %c0_i32, %arg0 : i32, i32
  }
  func.func @transform_4(%arg0: i32) -> (i32, i32) {
    %c0_i32 = arith.constant 0 : i32
    %c0_i32_0 = arith.constant 0 : i32
    return %c0_i32, %arg0 : i32, i32
  }
}

</mosaic_0001>

<bundles_post_ra>
// kernel: forward.3
= control target key start
LH: loop header
LB: loop body
LE: loop exit
PB: predicated region body
PF: predicated region fallthrough
CT: control target
= control target key end

     0   :  { %v201_v0 = vmov 0.0   ;;  %vm202_vm0 = vmmov 0   ;;  %s259_s1 = inlined_call_operand.vmem [shape: bf16[128,128], index: 1, kind: input, shape index: {}]   ;;  %s260_s0 = inlined_call_operand.vmem [shape: bf16[16,128], index: 0, kind: input, shape index: {}]   ;;  %s261_s2 = inlined_call_operand.vmem [shape: f32[1,128], index: 2, kind: input, shape index: {}]   ;;  %s262_s3 = inlined_call_operand.vmem [shape: f32[16,128], index: 3, kind: output, shape index: {}]  }
   0x1   :  { %170 = vmatprep.subr.bf16.mxu0 %v201_v0  ;;  %v192_v1 = vld [vmem:[%s259_s1] sm:$0xff]   ;;  %186 = vmatprep.mubr.msk.bf16.mxu0 %vm202_vm0, %v201_v0  ;;  %v193_v2 = vld [vmem:[%s259_s1 + $0x8] sm:$0xff]   ;;  %v194_v3 = vld [vmem:[%s259_s1 + $0x10] sm:$0xff]  }
   0x2   :  { %171 = vmatpush3.bf16.msra.mxu0 %v192_v1  ;;  %v195_v4 = vld [vmem:[%s259_s1 + $0x18] sm:$0xff]   ;;  %v196_v5 = vld [vmem:[%s259_s1 + $0x20] sm:$0xff]   ;;  %v197_v6 = vld [vmem:[%s259_s1 + $0x28] sm:$0xff]  }
   0x3   :  { %172 = vmatprep.subr.bf16.mxu0 %v201_v0  ;;  %v198_v7 = vld [vmem:[%s259_s1 + $0x30] sm:$0xff]   ;;  %v199_v8 = vld [vmem:[%s259_s1 + $0x38] sm:$0xff]   ;;  %v200_v9 = vld [vmem:[%s260_s0] sm:$0xff]  }
   0x4   :  { %v151_v10 = vld [vmem:[%s261_s2] ss:$0 sm:$0xff] }
   0x6   :  { %173 = vmatpush3.bf16.msra.mxu0 %v193_v2 }
   0x7   :  { %174 = vmatprep.subr.bf16.mxu0 %v201_v0 }
   0xa   :  { %175 = vmatpush3.bf16.msra.mxu0 %v194_v3 }
   0xb   :  { %176 = vmatprep.subr.bf16.mxu0 %v201_v0 }
   0xe   :  { %177 = vmatpush3.bf16.msra.mxu0 %v195_v4 }
   0xf   :  { %178 = vmatprep.subr.bf16.mxu0 %v201_v0 }
  0x12   :  { %179 = vmatpush3.bf16.msra.mxu0 %v196_v5 }
  0x13   :  { %180 = vmatprep.subr.bf16.mxu0 %v201_v0 }
  0x16   :  { %181 = vmatpush3.bf16.msra.mxu0 %v197_v6 }
  0x17   :  { %182 = vmatprep.subr.bf16.mxu0 %v201_v0 }
  0x1a   :  { %183 = vmatpush3.bf16.msra.mxu0 %v198_v7 }
  0x1b   :  { %184 = vmatprep.subr.bf16.mxu0 %v201_v0 }
  0x1e   :  { %185 = vmatpush3.bf16.msra.mxu0 %v199_v8 }
  0x21   :  { %187 = vmatmul.mubr.bf16.vlgmr.msra.gmra.mrb[0].mxu0 %v200_v9 }
  0xf4   :  { %v136_v11 = vpop.f32.mrb[0].mxu0 }
  0xf5   :  { %v143_v12 = vadd.f32 %v151_v10, %v136_v11  ;;  %v188_v13 = vpop.f32.mrb[1].mxu0 }
  0xf6   :  { %v139_v14 = vpop.f32.mrb[2].mxu0 }
  0xf7   :  { %145 = vst [vmem:[%s262_s3] sm:$0xff] %v143_v12  ;;  %v144_v15 = vadd.f32 %v151_v10, %v139_v14  ;;  %v189_v16 = vpop.f32.mrb[3].mxu0 }
  0xf9   :  { %146 = vst [vmem:[%s262_s3 + $0x8] sm:$0xff] %v144_v15 }

// kernel: forward.2
= control target key start
LH: loop header
LB: loop body
LE: loop exit
PB: predicated region body
PF: predicated region fallthrough
CT: control target
= control target key end

     0   :  { %9 = vsyncpa [#allocation3], 0  ;;  %s395_s0 = inlined_call_operand.vmem [shape: bf16[16,128], index: 0, kind: input, shape index: {}]   ;;  %s396_s1 = inlined_call_operand.hbm [shape: bf16[128,128], index: 1, kind: input, shape index: {}]   ;;  %s397_s2 = inlined_call_operand.hbm [shape: f32[1,128], index: 2, kind: input, shape index: {}]   ;;  %s398_s3 = inlined_call_operand.vmem [shape: f32[1,128], index: 3, kind: input, shape index: {}]   ;;  %s399_s4 = inlined_call_operand.vmem [shape: bf16[16,128], index: 4, kind: output, shape index: {}]  }
   0x1   :  { %10 = vsyncpa [#allocation5], 0  ;;  %s331_s15 = smov [#allocation2]   ;;  %s283_s19 = scalar_lea.hbm %s396_s1, 1024 }
   0x2   :  { %s18_s16 = sshll.u32 %s331_s15, 4  ;;  %p284_p0 = scmp.ne.s32.totalorder %s396_s1, %s283_s19  ;;  %s19_s16 = int_to_ptr.vmem [resolvable:$true] %s18_s16 }
   0x3   :  { %p287_p1 = scmp.lt.u32.totalorder %s283_s19, %s396_s1 }
   0x5   :  { %p289_p2 = pnand %p287_p1, %p284_p0 }
   0x7   :  { %292 = shalt.err (!%p289_p2)
}
   0x8   :  { %s293_s24 = scalar_lea.vmem %s19_s16, 1024  ;;  %p298_p4 = scmp.lt.s32.totalorder %s19_s16, %s19_s16 }
   0x9   :  { %p294_p3 = scmp.ne.s32.totalorder %s19_s16, %s293_s24  ;;  %p299_p5 = scmp.lt.s32.totalorder %s293_s24, %s293_s24 }
   0xb   :  { %p300_p6 = por %p299_p5, %p298_p4 }
   0xd   :  { %p301_p7 = pnand %p300_p6, %p294_p3 }
   0xf   :  { %304 = shalt.err (!%p301_p7)
}
  0x10   :  { %s332_s25 = smov 64   ;;  %s333_s26 = smov 4  }
  0x11   :  { %24 = dma.hbm_to_vmem [thread:$0]  %s396_s1, 1024, %s19_s16, [#allocation3], %s332_s25, %s332_s25, %s333_s26  }
  0x12   :  { %s334_s29 = smov [#allocation4]   ;;  %s305_s7 = scalar_lea.hbm %s397_s2, 16 }
  0x13   :  { %s31_s30 = sshll.u32 %s334_s29, 4  ;;  %p306_p8 = scmp.ne.s32.totalorder %s397_s2, %s305_s7  ;;  %s32_s30 = int_to_ptr.vmem [resolvable:$true] %s31_s30 }
  0x14   :  { %p309_p9 = scmp.lt.u32.totalorder %s305_s7, %s397_s2 }
  0x16   :  { %p311_p10 = pnand %p309_p9, %p306_p8 }
  0x18   :  { %314 = shalt.err (!%p311_p10)
}
  0x19   :  { %s315_s12 = scalar_lea.vmem %s32_s30, 16  ;;  %s319_s1 = scalar_lea.vmem %s32_s30, 32 }
  0x1a   :  { %p316_p11 = scmp.ne.s32.totalorder %s32_s30, %s315_s12  ;;  %p320_p12 = scmp.lt.s32.totalorder %s32_s30, %s32_s30 }
  0x1b   :  { %p321_p13 = scmp.lt.s32.totalorder %s319_s1, %s315_s12 }
  0x1d   :  { %p322_p0 = por %p321_p13, %p320_p12 }
  0x1f   :  { %p323_p1 = pnand %p322_p0, %p316_p11 }
  0x21   :  { %326 = shalt.err (!%p323_p1)
}
  0x22   :  { %34 = dma.hbm_to_vmem [thread:$0]  %s397_s2, 16, %s32_s30, [#allocation5]  }
  0x23   :  { %327 = dma.done.wait [#allocation3], 1024  }
  0x24   :  { %328 = vsyncadd [#allocation3], 4294966272 }
  0x25   :  { %329 = dma.done.wait [#allocation5], 16  }
  0x26   :  { %330 = vsyncadd [#allocation5], 4294967280  ;;  %v335_v0 = vmov 0.0   ;;  %vm336_vm0 = vmmov 0   ;;  %v272_v1 = vld [vmem:[#allocation2] sm:$0xff]   ;;  %v273_v2 = vld [vmem:[#allocation2 + $0x8] sm:$0xff]   ;;  %v186_v36 = vlaneseq }
  0x27   :  { %246 = vmatprep.subr.bf16.mxu0 %v335_v0  ;;  %262 = vmatprep.mubr.msk.bf16.mxu0 %vm336_vm0, %v335_v0  ;;  %v274_v3 = vld [vmem:[#allocation2 + $0x10] sm:$0xff]   ;;  %v275_v4 = vld [vmem:[#allocation2 + $0x18] sm:$0xff]   ;;  %v276_v5 = vld [vmem:[#allocation2 + $0x20] sm:$0xff]  }
  0x28   :  { %247 = vmatpush3.bf16.msra.mxu0 %v272_v1  ;;  %v277_v6 = vld [vmem:[#allocation2 + $0x28] sm:$0xff]   ;;  %v278_v7 = vld [vmem:[#allocation2 + $0x30] sm:$0xff]   ;;  %v279_v8 = vld [vmem:[#allocation2 + $0x38] sm:$0xff]   ;;  %v187_v37 = vshrl.u32 %v186_v36, 7 }
  0x29   :  { %248 = vmatprep.subr.bf16.mxu0 %v335_v0  ;;  %v280_v9 = vld [vmem:[%s395_s0] sm:$0xff]  }
  0x2a   :  { %v178_v38 = vld [vmem:[#allocation4] sm:$0x1]  ;;  %v188_v39 = vsub.s32 0, %v187_v37 }
  0x2b   :  { %v182_v42 = vld [vmem:[%s398_s3] sm:$0x1] }
  0x2c   :  { %249 = vmatpush3.bf16.msra.mxu0 %v273_v2 }
  0x2d   :  { %250 = vmatprep.subr.bf16.mxu0 %v335_v0 }
  0x30   :  { %251 = vmatpush3.bf16.msra.mxu0 %v274_v3 }
  0x31   :  { %252 = vmatprep.subr.bf16.mxu0 %v335_v0 }
  0x34   :  { %253 = vmatpush3.bf16.msra.mxu0 %v275_v4 }
  0x35   :  { %254 = vmatprep.subr.bf16.mxu0 %v335_v0 }
  0x38   :  { %255 = vmatpush3.bf16.msra.mxu0 %v276_v5 }
  0x39   :  { %256 = vmatprep.subr.bf16.mxu0 %v335_v0 }
  0x3c   :  { %257 = vmatpush3.bf16.msra.mxu0 %v277_v6 }
  0x3d   :  { %258 = vmatprep.subr.bf16.mxu0 %v335_v0 }
  0x40   :  { %259 = vmatpush3.bf16.msra.mxu0 %v278_v7 }
  0x41   :  { %260 = vmatprep.subr.bf16.mxu0 %v335_v0 }
  0x44   :  { %261 = vmatpush3.bf16.msra.mxu0 %v279_v8 }
  0x47   :  { %263 = vmatmul.mubr.bf16.vlgmr.msra.gmra.mrb[0].mxu0 %v280_v9 }
 0x11a   :  { %v150_v10 = vpop.f32.mrb[0].mxu0 }
 0x11b   :  { %v264_v11 = vpop.f32.mrb[1].mxu0  ;;  %v165_v13 = vmul.f32 %v150_v10, %v150_v10 }
 0x11c   :  { %v153_v12 = vpop.f32.mrb[2].mxu0 }
 0x11d   :  { %v157_v14 = vadd.f32 %v153_v12, %v150_v10  ;;  %v166_v15 = vmul.f32 %v153_v12, %v153_v12  ;;  %v265_v16 = vpop.f32.mrb[3].mxu0 }
 0x11f   :  { %v158_v17 = vrot.slane %v157_v14, 4  ;;  %v167_v18 = vadd.f32 %v166_v15, %v165_v13 }
 0x121   :  { %v159_v19 = vadd.f32 %v158_v17, %v157_v14  ;;  %v168_v20 = vrot.slane %v167_v18, 4 }
 0x123   :  { %v160_v21 = vrot.slane %v159_v19, 2  ;;  %v169_v22 = vadd.f32 %v168_v20, %v167_v18 }
 0x125   :  { %v161_v23 = vadd.f32 %v160_v21, %v159_v19  ;;  %v170_v24 = vrot.slane %v169_v22, 2 }
 0x127   :  { %v162_v25 = vrot.slane %v161_v23, 1  ;;  %v171_v26 = vadd.f32 %v170_v24, %v169_v22 }
 0x129   :  { %v163_v27 = vadd.f32 %v162_v25, %v161_v23  ;;  %v172_v28 = vrot.slane %v171_v26, 1 }
 0x12b   :  { %v164_v29 = vmul.f32 0.125, %v163_v27  ;;  %v173_v30 = vadd.f32 %v172_v28, %v171_v26 }
 0x12d   :  { %v174_v31 = vmul.f32 0.125, %v173_v30  ;;  %v175_v32 = vmul.f32 %v164_v29, %v164_v29 }
 0x12f   :  { %v176_v33 = vsub.f32 %v174_v31, %v175_v32 }
 0x131   :  { %v177_v34 = vmax.f32 %v176_v33, 0.0 }
 0x133   :  { %v179_v35 = vadd.f32 1e-05, %v177_v34 }
 0x135   :  { %281 = vrsqrt.f32 %v179_v35 }
 0x13f   :  { %v282_v40 = vpop.eup %281 }
 0x140   :  { %v181_v41 = vmul.f32 %v282_v40, %v178_v38 }
 0x142   :  { %v183_v43 = vmul.f32 %v181_v41, %v164_v29  ;;  %v189_v44 = vrot.slane %v181_v41, %v188_v39 }
 0x144   :  { %v184_v45 = vsub.f32 %v182_v42, %v183_v43  ;;  %v191_v46 = vmul.f32 %v189_v44, %v150_v10  ;;  %v192_v47 = vmul.f32 %v189_v44, %v153_v12 }
 0x146   :  { %v197_v48 = vrot.slane %v184_v45, %v188_v39 }
 0x148   :  { %v199_v49 = vadd.f32 %v197_v48, %v191_v46  ;;  %v200_v50 = vadd.f32 %v197_v48, %v192_v47 }
 0x14a   :  { %v201_v51 = vmax.f32 %v199_v49, 0.0  ;;  %v202_v52 = vmax.f32 %v200_v50, 0.0 }
 0x14c   :  { %v235_v53 = vpack.c.bf16 %v202_v52, %v201_v51 }
 0x14e   :  { %236 = vst [vmem:[%s399_s4] sm:$0xff] %v235_v53  }
 0x14f   :  { %217 = vsyncpa [#allocation3], 1 }
 0x150   :  { %218 = vsyncpa [#allocation5], 1 }

</bundles_post_ra>
